<compile_context>
chip_gen: v5e
topology: v5e:2x2
jax: 0.10.0
libtpu: 0.0.40
codegen_flags: <defaults>
</compile_context>

<pallas_src>
import functools
import math

import jax
import jax.numpy as jnp
import numpy as np
from jax.experimental import pallas as pl
from jax.experimental.pallas import tpu as pltpu


# ----------------------------------------------------------------------------
# Bilinear interpolation weight matrix (matches F.interpolate, align_corners=False)
# ----------------------------------------------------------------------------
def bilinear_matrix(out_size: int, in_size: int) -> jnp.ndarray:
    scale = in_size / out_size
    dst = jnp.arange(out_size, dtype=jnp.float32)
    src = (dst + 0.5) * scale - 0.5
    src = jnp.maximum(src, 0.0)                       # PyTorch clamps source idx >= 0
    i0 = jnp.clip(jnp.floor(src).astype(jnp.int32), 0, in_size - 1)
    i1 = jnp.clip(i0 + 1, 0, in_size - 1)
    w1 = src - i0.astype(jnp.float32)
    w0 = 1.0 - w1
    mat = (jax.nn.one_hot(i0, in_size, dtype=jnp.float32) * w0[:, None]
           + jax.nn.one_hot(i1, in_size, dtype=jnp.float32) * w1[:, None])
    return mat                                        # [out_size, in_size]


# ----------------------------------------------------------------------------
# Pallas kernel: NB instances per grid step, instances+frames folded into lanes
# ----------------------------------------------------------------------------
def _pseudo_mask_kernel(pseudo_ref, box_ref, wy_ref, wxtbd_ref, segcat_ref,
                        masks_out_ref, score_out_ref, *, w: int):
    # pseudo_ref : [Hp, NB*T*Wp]      f32 logits, lanes ordered (inst, frame, wp)
    # box_ref    : [H,  NB*T*W ]      f32 {0,1},  lanes ordered (inst, frame, w)
    # wy_ref     : [H, Hp]            f32 bilinear H-resize weights
    # wxtbd_ref  : [NB*T*Wp, NB*T*W]  f32 block-diag W-resize weights (Wx^T blocks)
    # segcat_ref : [NB*T*W, 256]      f32 [:, :128]  = per-instance column membership
    #                                     [:, 128:]  = membership restricted to w == 0
    # masks_out  : [H, NB*T*W]        f32 box * sigmoid(interp)
    # score_out  : [1, 8, 128]        f32 lane i = projection score of instance i

    # --- bilinear resize: two single MXU matmuls for all instances & frames ---
    q = jnp.dot(pseudo_ref[...], wxtbd_ref[...],
                preferred_element_type=jnp.float32)                # [Hp, NB*T*W]
    interp = jnp.dot(wy_ref[...], q,
                     preferred_element_type=jnp.float32)           # [H, NB*T*W]

    sig = jax.nn.sigmoid(interp)
    box = box_ref[...]
    masks_out_ref[...] = box * sig                  # lane-dense, unmasked store

    # --- y projection: max over H (sublane axis), batched over instances ------
    py = jnp.max(sig, axis=0, keepdims=True)        # [1, NB*T*W]
    by = jnp.max(box, axis=0, keepdims=True)

    # --- x projection: segmented max over each frame's W lanes ----------------
    # Log-step lane rolls: after the loop, the FIRST lane of every W-wide
    # segment holds that segment's max (other lanes hold cross-segment windows
    # that the boundary-restricted half of segcat zeroes out in the dot below).
    px, bx = sig, box
    lanes = sig.shape[-1]
    reach = 1
    while reach < w:
        s = min(reach, w - reach)
        shift = lanes - s                           # roll by -s: lane j reads lane j+s
        px = jnp.maximum(px, pltpu.roll(px, shift=shift, axis=1))
        bx = jnp.maximum(bx, pltpu.roll(bx, shift=shift, axis=1))
        reach += s
    num_x_col = jnp.sum(px * bx, axis=0, keepdims=True)            # [1, NB*T*W]
    den_x_col = jnp.sum(px * px + bx * bx, axis=0, keepdims=True)

    # --- all per-instance num/den sums with ONE small MXU matmul --------------
    rows = jnp.concatenate(
        [py * by, py * py + by * by, num_x_col, den_x_col], axis=0)  # [4, NB*T*W]
    sums = jnp.dot(rows, segcat_ref[...],
                   preferred_element_type=jnp.float32)               # [4, 256]
    num_y = 2.0 * sums[0:1, :128]
    den_y = sums[1:2, :128]
    num_x = 2.0 * sums[2:3, 128:]
    den_x = sums[3:4, 128:]
    score_row = 0.5 * (num_x / jnp.maximum(den_x, 1e-6)
                       + num_y / jnp.maximum(den_y, 1e-6))           # [1, 128]
    score_out_ref[0] = jnp.broadcast_to(score_row, (8, 128))         # full-tile store


def _choose_nb(t: int, wp: int, w: int) -> int:
    # Smallest instance-group size keeping both lane-block widths (nb*T*Wp,
    # nb*T*W) 128-aligned, scaled up to >= 8 instances per grid step to
    # amortize the per-step pipeline overhead.
    a = 128 // math.gcd(t * wp, 128)
    b = 128 // math.gcd(t * w, 128)
    nb = a * b // math.gcd(a, b)
    if nb < 8:
        nb *= -(-8 // nb)
    return nb


def pseudo_mask_pallas(masks_pseudo: jnp.ndarray, box_masks: jnp.ndarray):
    """masks_pseudo: [N, T, Hp, Wp] logits; box_masks: [N, T, H, W] {0,1} floats.

    Returns (masks_pseudo_out [N,T,H,W] f32, proj_score [N] f32).
    """
    N, T, Hp, Wp = masks_pseudo.shape
    _, _, H, W = box_masks.shape

    nb = _choose_nb(T, Wp, W)
    assert nb <= 128
    n_pad = -(-N // nb) * nb
    g = n_pad // nb                       # for N >= 2*nb this is >= 2, so the
    Lp = nb * T * Wp                      # "parallel" grid axis can shard across
    L = nb * T * W                        # v7x's two TensorCores.

    # Bilinear weights; Wx^T replicated block-diagonally over the nb*T
    # (instance, frame) lane groups so the W-resize of the whole step is one
    # matmul.  (Wastes (nb*T-1)/(nb*T) of the MXU FLOPs, but those FLOPs are
    # negligible at these shapes.)
    wy = bilinear_matrix(H, Hp)                                    # [H, Hp]
    wxt = bilinear_matrix(W, Wp).T                                 # [Wp, W]
    wxtbd = jnp.kron(jnp.eye(nb * T, dtype=jnp.float32), wxt)     # [Lp, L]

    # Layout plumbing (wrapper side): instances + frames folded into lanes.
    pseudo_l = jnp.transpose(masks_pseudo.astype(jnp.float32),
                             (2, 0, 1, 3)).reshape(Hp, N * T * Wp)
    box_l = jnp.transpose(box_masks.astype(jnp.float32),
                          (2, 0, 1, 3)).reshape(H, N * T * W)
    if n_pad != N:
        pseudo_l = jnp.pad(pseudo_l, ((0, 0), (0, (n_pad - N) * T * Wp)))
        box_l = jnp.pad(box_l, ((0, 0), (0, (n_pad - N) * T * W)))

    # Per-instance segment-membership matrices for the batched dice sums:
    #   columns :128  -> all T*W columns of instance i           (y-projection)
    #   columns 128:  -> only the w==0 boundary column per frame (x-projection)
    col = np.arange(L)
    inst = col // (T * W)
    one_hot = (inst[:, None] == np.arange(128)[None, :]).astype(np.float32)
    bound = (col % W == 0).astype(np.float32)[:, None]
    segcat = jnp.asarray(np.concatenate([one_hot, one_hot * bound], axis=1))

    kernel = functools.partial(_pseudo_mask_kernel, w=W)

    masks_l, score_blk = pl.pallas_call(
        kernel,
        out_shape=(
            jax.ShapeDtypeStruct((H, n_pad * T * W), jnp.float32),
            jax.ShapeDtypeStruct((g, 8, 128), jnp.float32),
        ),
        grid_spec=pltpu.PrefetchScalarGridSpec(
            num_scalar_prefetch=0,
            grid=(g,),
            in_specs=[
                pl.BlockSpec((Hp, Lp), lambda i: (0, i)),       # pseudo logits
                pl.BlockSpec((H, L), lambda i: (0, i)),         # box masks
                pl.BlockSpec((H, Hp), lambda i: (0, 0)),        # Wy
                pl.BlockSpec((Lp, L), lambda i: (0, 0)),        # blockdiag(Wx^T)
                pl.BlockSpec((L, 256), lambda i: (0, 0)),       # segment matrices
            ],
            out_specs=[
                pl.BlockSpec((H, L), lambda i: (0, i)),         # pseudo masks
                pl.BlockSpec((1, 8, 128), lambda i: (i, 0, 0)),  # scores
            ],
        ),
        compiler_params=pltpu.CompilerParams(
            # Every output block is owned by exactly one grid step (no resident
            # accumulator), so the instance-group axis can shard across cores.
            dimension_semantics=("parallel",),
        ),
    )(pseudo_l, box_l, wy, wxtbd, segcat)

    # Undo the lane-folded layout in the wrapper.
    masks = (masks_l[:, :N * T * W]
             .reshape(H, N, T, W)
             .transpose(1, 2, 0, 3))                              # [N, T, H, W]
    scores = score_blk[:, 0, :nb].reshape(g * nb)[:N]
    return masks, scores


# ----------------------------------------------------------------------------
# Pure-JAX reference (for a sanity check)
# ----------------------------------------------------------------------------
def reference_pseudo(masks_pseudo, box_masks):
    N, T, Hp, Wp = masks_pseudo.shape
    _, _, H, W = box_masks.shape
    hi = jax.lax.Precision.HIGHEST
    wy = bilinear_matrix(H, Hp)
    wxt = bilinear_matrix(W, Wp).T
    interp = jnp.einsum('hp,ntpq->nthq', wy, masks_pseudo.astype(jnp.float32),
                        precision=hi)
    interp = jnp.einsum('nthq,qw->nthw', interp, wxt, precision=hi)
    sig = jax.nn.sigmoid(interp)
    out_masks = box_masks * sig
    py = sig.max(axis=2).reshape(N, -1)
    by = box_masks.max(axis=2).reshape(N, -1)
    proj_y = 2 * (py * by).sum(-1) / jnp.maximum((py**2).sum(-1) + (by**2).sum(-1), 1e-6)
    px = sig.max(axis=3).reshape(N, -1)
    bx = box_masks.max(axis=3).reshape(N, -1)
    proj_x = 2 * (px * bx).sum(-1) / jnp.maximum((px**2).sum(-1) + (bx**2).sum(-1), 1e-6)
    return out_masks, 0.5 * (proj_x + proj_y)


# ----------------------------------------------------------------------------
# Module-level forward (matcher + set_pseudo_mask + per-target scoring)
# ----------------------------------------------------------------------------
def synthetic_matcher(outputs, targets):
    # TODO(synk): the real Hungarian matcher is an external module; a deterministic
    #             synthetic assignment is used here instead.
    indices = []
    Q = outputs['pred_logits'].shape[1]
    for i, target in enumerate(targets):
        n = target['masks'].shape[0]
        src_idx = (jnp.arange(n, dtype=jnp.int32) * 2 + i) % Q
        tgt_idx = jnp.arange(n, dtype=jnp.int32)[::-1]   # reversed -> exercises the sort
        indices.append((src_idx, tgt_idx))
    return indices


def boxvis_teacher_set_pseudo_mask(outputs, targets, matcher=synthetic_matcher):
    outputs_without_aux = {k: v for k, v in outputs.items() if k != 'aux_outputs'}
    indices = matcher(outputs_without_aux, targets)

    src_masks = outputs_without_aux['pred_masks']                        # [B,Q,T,Hp,Wp]
    src_logits = jax.nn.softmax(outputs_without_aux['pred_logits'], -1)  # [B,Q,C]

    new_targets = []
    for i, ((src_idx, tgt_idx), target) in enumerate(zip(indices, targets)):
        assert int(tgt_idx.shape[0]) == int(target['masks'].shape[0])
        order = jnp.argsort(tgt_idx)                  # == tgt_idx.sort() reorder
        src_idx_sorted = src_idx[order]
        labels = target['labels']

        pseudo_scores = src_logits[i, src_idx_sorted, labels]            # [N]
        masks_pseudo_logits = src_masks[i, src_idx_sorted]               # [N,T,Hp,Wp]
        box_masks = target['masks'].astype(jnp.float32)                  # [N,T,H,W]

        masks_pseudo, proj_score = pseudo_mask_pallas(masks_pseudo_logits, box_masks)

        new_t = dict(target)
        new_t['mask_pseudo_scores'] = pseudo_scores * proj_score
        new_t['masks_pseudo'] = masks_pseudo
        new_targets.append(new_t)
    return new_targets


# ----------------------------------------------------------------------------
# Deterministic example inputs
# ----------------------------------------------------------------------------
def make_box_masks(key, n, t, h, w):
    k1, k2, k3, k4 = jax.random.split(key, 4)
    y0 = jax.random.randint(k1, (n, t), 0, h // 2)
    y1 = jax.random.randint(k2, (n, t), h // 2, h)
    x0 = jax.random.randint(k3, (n, t), 0, w // 2)
    x1 = jax.random.randint(k4, (n, t), w // 2, w)
    ys = jnp.arange(h)[None, None, :, None]
    xs = jnp.arange(w)[None, None, None, :]
    m = ((ys >= y0[..., None, None]) & (ys < y1[..., None, None]) &
         (xs >= x0[..., None, None]) & (xs < x1[..., None, None]))
    return m.astype(jnp.float32)


if __name__ == "__main__":
    key = jax.random.PRNGKey(0)
    B, Q, C = 2, 8, 6           # batch, queries, classes
    T = 2                       # frames
    Hp = Wp = 8                 # predicted mask resolution
    H = W = 16                  # target (box mask) resolution
    Ns = [3, 2]                 # instances per batch element

    k_masks, k_logits, k_tgt = jax.random.split(key, 3)
    outputs = {
        'pred_masks': jax.random.normal(k_masks, (B, Q, T, Hp, Wp), jnp.float32),
        'pred_logits': jax.random.normal(k_logits, (B, Q, C), jnp.float32),
        'aux_outputs': None,    # filtered out, as in the PyTorch module
    }

    targets = []
    for b in range(B):
        kb, kl, k_tgt = jax.random.split(k_tgt, 3)
        targets.append({
            'masks': make_box_masks(kb, Ns[b], T, H, W),
            'labels': jax.random.randint(kl, (Ns[b],), 0, C),
        })

    results = boxvis_teacher_set_pseudo_mask(outputs, targets)
    results = jax.block_until_ready(results)

    # sanity check against the pure-f32 JAX reference
    indices = synthetic_matcher(outputs, targets)
    src_masks = outputs['pred_masks']
    for i, ((src_idx, tgt_idx), target) in enumerate(zip(indices, targets)):
        order = jnp.argsort(tgt_idx)
        mp = src_masks[i, src_idx[order]]
        ref_masks, ref_proj = reference_pseudo(mp, target['masks'].astype(jnp.float32))
        pseudo_scores = jax.nn.softmax(outputs['pred_logits'], -1)[
            i, src_idx[order], target['labels']]
        np.testing.assert_allclose(np.asarray(results[i]['masks_pseudo']),
                                   np.asarray(ref_masks), rtol=1e-2, atol=1e-2)
        np.testing.assert_allclose(np.asarray(results[i]['mask_pseudo_scores']),
                                   np.asarray(pseudo_scores * ref_proj),
                                   rtol=1e-2, atol=1e-2)

    print("KERNEL_OK")
</pallas_src>

<mosaic_0001>
module attributes {stable_mosaic.version = 11 : i64} {
  func.func @_pseudo_mask_kernel(%arg0: i32, %arg1: memref<8x128xf32, #tpu.memory_space<vmem>>, %arg2: memref<16x256xf32, #tpu.memory_space<vmem>>, %arg3: memref<16x8xf32, #tpu.memory_space<vmem>>, %arg4: memref<128x256xf32, #tpu.memory_space<vmem>>, %arg5: memref<256x256xf32, #tpu.memory_space<vmem>>, %arg6: memref<16x256xf32, #tpu.memory_space<vmem>>, %arg7: memref<1x8x128xf32, #tpu.memory_space<vmem>>) attributes {dimension_semantics = [#tpu.dimension_semantics<parallel>], iteration_bounds = array<i64: 1>, scalar_prefetch = 0 : i64, scratch_operands = 0 : i64, tpu.core_type = #tpu.core_type<tc>, window_params = [{transform_indices = @transform_0, window_bounds = array<i64: 8, 128>}, {transform_indices = @transform_1, window_bounds = array<i64: 16, 256>}, {pipeline_mode = #tpu.pipeline_mode<synchronous>, transform_indices = @transform_2, window_bounds = array<i64: 16, 8>}, {pipeline_mode = #tpu.pipeline_mode<synchronous>, transform_indices = @transform_3, window_bounds = array<i64: 128, 256>}, {pipeline_mode = #tpu.pipeline_mode<synchronous>, transform_indices = @transform_4, window_bounds = array<i64: 256, 256>}, {transform_indices = @transform_5, window_bounds = array<i64: 16, 256>}, {transform_indices = @transform_6, window_bounds = array<i64: 1, 8, 128>}]} {
    %c0 = arith.constant 0 : index
    %c0_0 = arith.constant 0 : index
    %0 = vector.load %arg1[%c0, %c0_0] : memref<8x128xf32, #tpu.memory_space<vmem>>, vector<8x128xf32>
    %c0_1 = arith.constant 0 : index
    %c0_2 = arith.constant 0 : index
    %1 = vector.load %arg4[%c0_1, %c0_2] : memref<128x256xf32, #tpu.memory_space<vmem>>, vector<128x256xf32>
    %cst = arith.constant dense<0.000000e+00> : vector<8x256xf32>
    %2 = tpu.matmul %0, %1, %cst {dimension_numbers = #tpu.dot_dimension_numbers<[1], [0], [0], [1], [0, 0, 1, 1], [], []>} : vector<8x128xf32>, vector<128x256xf32>, vector<8x256xf32> -> vector<8x256xf32>
    %c0_3 = arith.constant 0 : index
    %c0_4 = arith.constant 0 : index
    %3 = vector.load %arg3[%c0_3, %c0_4] : memref<16x8xf32, #tpu.memory_space<vmem>>, vector<16x8xf32>
    %cst_5 = arith.constant dense<0.000000e+00> : vector<16x256xf32>
    %4 = tpu.matmul %3, %2, %cst_5 {dimension_numbers = #tpu.dot_dimension_numbers<[1], [0], [0], [1], [0, 0, 1, 1], [], []>} : vector<16x8xf32>, vector<8x256xf32>, vector<16x256xf32> -> vector<16x256xf32>
    %5 = arith.negf %4 : vector<16x256xf32>
    %6 = math.exp %5 : vector<16x256xf32>
    %cst_6 = arith.constant 1.000000e+00 : f32
    %7 = vector.broadcast %cst_6 : f32 to vector<16x256xf32>
    %8 = arith.addf %7, %6 : vector<16x256xf32>
    %9 = arith.divf %7, %8 : vector<16x256xf32>
    %c0_7 = arith.constant 0 : index
    %c0_8 = arith.constant 0 : index
    %10 = vector.load %arg2[%c0_7, %c0_8] : memref<16x256xf32, #tpu.memory_space<vmem>>, vector<16x256xf32>
    %11 = arith.mulf %10, %9 : vector<16x256xf32>
    %c0_9 = arith.constant 0 : index
    %c0_10 = arith.constant 0 : index
    %12 = vector.load %arg6[%c0_9, %c0_10] : memref<16x256xf32, #tpu.memory_space<vmem>>, vector<16x256xf32>
    tpu.vector_store %arg6[%c0_9, %c0_10], %11 {strides = array<i32>} : memref<16x256xf32, #tpu.memory_space<vmem>>, vector<16x256xf32>,
    %cst_11 = arith.constant dense<0xFF800000> : vector<256xf32>
    %13 = vector.multi_reduction <maximumf>, %9, %cst_11 [0] : vector<16x256xf32> to vector<256xf32>
    %14 = vector.shape_cast %13 : vector<256xf32> to vector<1x256xf32>
    %cst_12 = arith.constant dense<0xFF800000> : vector<256xf32>
    %15 = vector.multi_reduction <maximumf>, %10, %cst_12 [0] : vector<16x256xf32> to vector<256xf32>
    %16 = vector.shape_cast %15 : vector<256xf32> to vector<1x256xf32>
    %c255_i32 = arith.constant 255 : i32
    %17 = tpu.dynamic_rotate %9 by %c255_i32 dim 1 : vector<16x256xf32>, i32 -> vector<16x256xf32>
    %18 = arith.maximumf %9, %17 : vector<16x256xf32>
    %c255_i32_13 = arith.constant 255 : i32
    %19 = tpu.dynamic_rotate %10 by %c255_i32_13 dim 1 : vector<16x256xf32>, i32 -> vector<16x256xf32>
    %20 = arith.maximumf %10, %19 : vector<16x256xf32>
    %c254_i32 = arith.constant 254 : i32
    %21 = tpu.dynamic_rotate %18 by %c254_i32 dim 1 : vector<16x256xf32>, i32 -> vector<16x256xf32>
    %22 = arith.maximumf %18, %21 : vector<16x256xf32>
    %c254_i32_14 = arith.constant 254 : i32
    %23 = tpu.dynamic_rotate %20 by %c254_i32_14 dim 1 : vector<16x256xf32>, i32 -> vector<16x256xf32>
    %24 = arith.maximumf %20, %23 : vector<16x256xf32>
    %c252_i32 = arith.constant 252 : i32
    %25 = tpu.dynamic_rotate %22 by %c252_i32 dim 1 : vector<16x256xf32>, i32 -> vector<16x256xf32>
    %26 = arith.maximumf %22, %25 : vector<16x256xf32>
    %c252_i32_15 = arith.constant 252 : i32
    %27 = tpu.dynamic_rotate %24 by %c252_i32_15 dim 1 : vector<16x256xf32>, i32 -> vector<16x256xf32>
    %28 = arith.maximumf %24, %27 : vector<16x256xf32>
    %c248_i32 = arith.constant 248 : i32
    %29 = tpu.dynamic_rotate %26 by %c248_i32 dim 1 : vector<16x256xf32>, i32 -> vector<16x256xf32>
    %30 = arith.maximumf %26, %29 : vector<16x256xf32>
    %c248_i32_16 = arith.constant 248 : i32
    %31 = tpu.dynamic_rotate %28 by %c248_i32_16 dim 1 : vector<16x256xf32>, i32 -> vector<16x256xf32>
    %32 = arith.maximumf %28, %31 : vector<16x256xf32>
    %33 = arith.mulf %30, %32 : vector<16x256xf32>
    %cst_17 = arith.constant dense<0.000000e+00> : vector<256xf32>
    %34 = vector.multi_reduction <add>, %33, %cst_17 [0] : vector<16x256xf32> to vector<256xf32>
    %35 = vector.shape_cast %34 : vector<256xf32> to vector<1x256xf32>
    %36 = arith.mulf %30, %30 : vector<16x256xf32>
    %37 = arith.mulf %32, %32 : vector<16x256xf32>
    %38 = arith.addf %36, %37 : vector<16x256xf32>
    %cst_18 = arith.constant dense<0.000000e+00> : vector<256xf32>
    %39 = vector.multi_reduction <add>, %38, %cst_18 [0] : vector<16x256xf32> to vector<256xf32>
    %40 = vector.shape_cast %39 : vector<256xf32> to vector<1x256xf32>
    %41 = arith.mulf %14, %16 : vector<1x256xf32>
    %42 = arith.mulf %14, %14 : vector<1x256xf32>
    %43 = arith.mulf %16, %16 : vector<1x256xf32>
    %44 = arith.addf %42, %43 : vector<1x256xf32>
    %45 = tpu.concatenate %41, %44, %35, %40 in 0 : vector<1x256xf32>, vector<1x256xf32>, vector<1x256xf32>, vector<1x256xf32> -> vector<4x256xf32>
    %c0_19 = arith.constant 0 : index
    %c0_20 = arith.constant 0 : index
    %46 = vector.load %arg5[%c0_19, %c0_20] : memref<256x256xf32, #tpu.memory_space<vmem>>, vector<256x256xf32>
    %cst_21 = arith.constant dense<0.000000e+00> : vector<4x256xf32>
    %47 = tpu.matmul %45, %46, %cst_21 {dimension_numbers = #tpu.dot_dimension_numbers<[1], [0], [0], [1], [0, 0, 1, 1], [], []>} : vector<4x256xf32>, vector<256x256xf32>, vector<4x256xf32> -> vector<4x256xf32>
    %48 = vector.extract_strided_slice %47 {offsets = [0, 0], sizes = [1, 128], strides = [1, 1]} : vector<4x256xf32> to vector<1x128xf32>
    %cst_22 = arith.constant 2.000000e+00 : f32
    %49 = vector.broadcast %cst_22 : f32 to vector<1x128xf32>
    %50 = arith.mulf %49, %48 : vector<1x128xf32>
    %51 = vector.extract_strided_slice %47 {offsets = [1, 0], sizes = [1, 128], strides = [1, 1]} : vector<4x256xf32> to vector<1x128xf32>
    %52 = vector.extract_strided_slice %47 {offsets = [2, 128], sizes = [1, 128], strides = [1, 1]} : vector<4x256xf32> to vector<1x128xf32>
    %cst_23 = arith.constant 2.000000e+00 : f32
    %53 = vector.broadcast %cst_23 : f32 to vector<1x128xf32>
    %54 = arith.mulf %53, %52 : vector<1x128xf32>
    %55 = vector.extract_strided_slice %47 {offsets = [3, 128], sizes = [1, 128], strides = [1, 1]} : vector<4x256xf32> to vector<1x128xf32>
    %cst_24 = arith.constant 9.99999997E-7 : f32
    %56 = vector.broadcast %cst_24 : f32 to vector<1x128xf32>
    %57 = arith.maximumf %55, %56 : vector<1x128xf32>
    %58 = arith.divf %54, %57 : vector<1x128xf32>
    %cst_25 = arith.constant 9.99999997E-7 : f32
    %59 = vector.broadcast %cst_25 : f32 to vector<1x128xf32>
    %60 = arith.maximumf %51, %59 : vector<1x128xf32>
    %61 = arith.divf %50, %60 : vector<1x128xf32>
    %62 = arith.addf %58, %61 : vector<1x128xf32>
    %cst_26 = arith.constant 5.000000e-01 : f32
    %63 = vector.broadcast %cst_26 : f32 to vector<1x128xf32>
    %64 = arith.mulf %63, %62 : vector<1x128xf32>
    %65 = vector.shape_cast %64 : vector<1x128xf32> to vector<1x128xf32>
    %66 = vector.broadcast %65 : vector<1x128xf32> to vector<8x128xf32>
    %c0_27 = arith.constant 0 : index
    %c0_28 = arith.constant 0 : index
    %c0_29 = arith.constant 0 : index
    %67 = vector.load %arg7[%c0_27, %c0_28, %c0_29] : memref<1x8x128xf32, #tpu.memory_space<vmem>>, vector<1x8x128xf32>
    %68 = vector.shape_cast %67 : vector<1x8x128xf32> to vector<8x128xf32>
    %69 = vector.shape_cast %66 : vector<8x128xf32> to vector<1x8x128xf32>
    tpu.vector_store %arg7[%c0_27, %c0_28, %c0_29], %69 {strides = array<i32>} : memref<1x8x128xf32, #tpu.memory_space<vmem>>, vector<1x8x128xf32>,
    return
  }
  func.func @transform_0(%arg0: i32) -> (i32, i32) {
    %c0_i32 = arith.constant 0 : i32
    %c0_i32_0 = arith.constant 0 : i32
    return %c0_i32, %arg0 : i32, i32
  }
  func.func @transform_1(%arg0: i32) -> (i32, i32) {
    %c0_i32 = arith.constant 0 : i32
    %c0_i32_0 = arith.constant 0 : i32
    return %c0_i32, %arg0 : i32, i32
  }
  func.func @transform_2(%arg0: i32) -> (i32, i32) {
    %c0_i32 = arith.constant 0 : i32
    %c0_i32_0 = arith.constant 0 : i32
    %c0_i32_1 = arith.constant 0 : i32
    return %c0_i32, %c0_i32_0 : i32, i32
  }
  func.func @transform_3(%arg0: i32) -> (i32, i32) {
    %c0_i32 = arith.constant 0 : i32
    %c0_i32_0 = arith.constant 0 : i32
    %c0_i32_1 = arith.constant 0 : i32
    return %c0_i32, %c0_i32_0 : i32, i32
  }
  func.func @transform_4(%arg0: i32) -> (i32, i32) {
    %c0_i32 = arith.constant 0 : i32
    %c0_i32_0 = arith.constant 0 : i32
    %c0_i32_1 = arith.constant 0 : i32
    return %c0_i32, %c0_i32_0 : i32, i32
  }
  func.func @transform_5(%arg0: i32) -> (i32, i32) {
    %c0_i32 = arith.constant 0 : i32
    %c0_i32_0 = arith.constant 0 : i32
    return %c0_i32, %arg0 : i32, i32
  }
  func.func @transform_6(%arg0: i32) -> (i32, i32, i32) {
    %c0_i32 = arith.constant 0 : i32
    %c0_i32_0 = arith.constant 0 : i32
    %c0_i32_1 = arith.constant 0 : i32
    return %arg0, %c0_i32, %c0_i32_0 : i32, i32, i32
  }
}

</mosaic_0001>

<bundles_post_ra>
// kernel: tpu_custom_call.1
= control target key start
LH: loop header
LB: loop body
LE: loop exit
PB: predicated region body
PF: predicated region fallthrough
CT: control target
= control target key end

     0   :  { %12 = vsyncpa [#allocation3], 0  ;;  %s1158_s0 = inlined_call_operand.vmem [shape: f32[8,128], index: 0, kind: input, shape index: {}]   ;;  %s1159_s1 = inlined_call_operand.hbm [shape: f32[16,256], index: 1, kind: input, shape index: {}]   ;;  %s1160_s2 = inlined_call_operand.vmem [shape: f32[16,8], index: 2, kind: input, shape index: {}]   ;;  %s1161_s3 = inlined_call_operand.hbm [shape: f32[128,256], index: 3, kind: input, shape index: {}]   ;;  %s1162_s4 = inlined_call_operand.hbm [shape: f32[256,256], index: 4, kind: input, shape index: {}]   ;;  %s1163_s5 = inlined_call_operand.hbm [shape: f32[16,256], index: 5, kind: output, shape index: {0}]   ;;  %s1164_s6 = inlined_call_operand.hbm [shape: f32[1,8,128], index: 6, kind: output, shape index: {1}]  }
   0x1   :  { %13 = vsyncpa [#allocation6], 0 }
   0x2   :  { %14 = vsyncpa [#allocation4], 0 }
   0x3   :  { %15 = vsyncpa [#allocation10], 0  ;;  %s37_s23 = sshll.u32 %s1161_s3, 4  ;;  %s904_s24 = smov [#allocation5]   ;;  %s38_s23 = int_to_ptr.hbm [resolvable:$true] %s37_s23 }
   0x4   :  { %s39_s25 = sshll.u32 %s904_s24, 4  ;;  %s22_s28 = sshll.u32 %s1159_s1, 4  ;;  %s40_s25 = int_to_ptr.vmem [resolvable:$true] %s39_s25  ;;  %s23_s28 = int_to_ptr.hbm [resolvable:$true] %s22_s28 }
   0x5   :  { %s905_s29 = smov 256   ;;  %s906_s30 = smov 16  }
   0x6   :  { %45 = dma.hbm_to_vmem [thread:$0]  %s38_s23, 4096, %s40_s25, [#allocation6], %s905_s29, %s905_s29, %s906_s30  }
   0x7   :  { %s907_s7 = smov [#allocation2]   ;;  %s50_s3 = sshll.u32 %s1162_s4, 4  ;;  %s51_s3 = int_to_ptr.hbm [resolvable:$true] %s50_s3 }
   0x8   :  { %s24_s8 = sshll.u32 %s907_s7, 4  ;;  %s908_s1 = smov [#allocation7]   ;;  %s25_s8 = int_to_ptr.vmem [resolvable:$true] %s24_s8 }
   0x9   :  { %30 = dma.hbm_to_vmem [thread:$0]  %s23_s28, 512, %s25_s8, [#allocation3], %s905_s29, %s905_s29, %s906_s30  }
   0xa   :  { %s52_s11 = sshll.u32 %s908_s1, 4  ;;  %s53_s11 = int_to_ptr.vmem [resolvable:$true] %s52_s11 }
   0xb   :  { %58 = dma.hbm_to_vmem [thread:$0]  %s51_s3, 8192, %s53_s11, [#allocation6], %s905_s29, %s905_s29, %s906_s30  }
   0xc   :  { %896 = dma.done.wait [#allocation3], 512  }
   0xd   :  { %897 = vsyncadd [#allocation3], 4294966784 }
   0xe   :  { %898 = dma.done.wait [#allocation6], 12288  }
   0xf   :  { %899 = vsyncadd [#allocation6], 4294955008  ;;  %v102_v0 = vld [vmem:[#allocation5 + $0xf0] sm:$0xff]  ;;  %v103_v1 = vld [vmem:[#allocation5 + $0xf8] sm:$0xff]  ;;  %vm146_vm0 = vcmask 64512   ;;  %s911_s17 = smov 124  }
  0x10   :  { %v100_v2 = vld [vmem:[#allocation5 + $0xe0] sm:$0xff]  ;;  %104 = vmatpush.msra.mxu0 %v102_v0  ;;  %124 = vmatpush.msra.mxu1 %v103_v1  ;;  %v101_v3 = vld [vmem:[#allocation5 + $0xe8] sm:$0xff]  ;;  %v98_v4 = vld [vmem:[#allocation5 + $0xd0] sm:$0xff]  ;;  %s912_s18 = smov 120   ;;  %s707_s21 = sshll.u32 %s1163_s5, 4  ;;  %s708_s21 = int_to_ptr.hbm [resolvable:$true] %s707_s21 }
  0x11   :  { %v99_v5 = vld [vmem:[#allocation5 + $0xd8] sm:$0xff]  ;;  %v96_v6 = vld [vmem:[#allocation5 + $0xc0] sm:$0xff]  ;;  %v97_v7 = vld [vmem:[#allocation5 + $0xc8] sm:$0xff]  ;;  %s913_s22 = smov [#allocation8]   ;;  %s914_s5 = smov [#allocation9]  }
  0x12   :  { %105 = vmatpush.msra.mxu0 %v100_v2  ;;  %125 = vmatpush.msra.mxu1 %v101_v3  ;;  %v94_v8 = vld [vmem:[#allocation5 + $0xb0] sm:$0xff]  ;;  %v95_v9 = vld [vmem:[#allocation5 + $0xb8] sm:$0xff]  ;;  %v92_v10 = vld [vmem:[#allocation5 + $0xa0] sm:$0xff]  ;;  %s705_s23 = sshll.u32 %s913_s22, 4  ;;  %s719_s24 = sshll.u32 %s914_s5, 4  ;;  %s706_s23 = int_to_ptr.vmem [resolvable:$true] %s705_s23  ;;  %s720_s24 = int_to_ptr.vmem [resolvable:$true] %s719_s24 }
  0x13   :  { %v93_v11 = vld [vmem:[#allocation5 + $0xa8] sm:$0xff]  ;;  %v90_v12 = vld [vmem:[#allocation5 + $0x90] sm:$0xff]  ;;  %v91_v13 = vld [vmem:[#allocation5 + $0x98] sm:$0xff]  ;;  %s721_s27 = sshll.u32 %s1164_s6, 4  ;;  %s722_s27 = int_to_ptr.hbm [resolvable:$true] %s721_s27 }
  0x14   :  { %106 = vmatpush.msra.mxu0 %v98_v4  ;;  %126 = vmatpush.msra.mxu1 %v99_v5  ;;  %v88_v14 = vld [vmem:[#allocation5 + $0x80] sm:$0xff]  ;;  %v89_v15 = vld [vmem:[#allocation5 + $0x88] sm:$0xff]  ;;  %v86_v16 = vld [vmem:[#allocation5 + $0x70] sm:$0xff] }
  0x15   :  { %v87_v17 = vld [vmem:[#allocation5 + $0x78] sm:$0xff]  ;;  %v84_v18 = vld [vmem:[#allocation5 + $0x60] sm:$0xff]  ;;  %v85_v19 = vld [vmem:[#allocation5 + $0x68] sm:$0xff] }
  0x16   :  { %107 = vmatpush.msra.mxu0 %v96_v6  ;;  %127 = vmatpush.msra.mxu1 %v97_v7  ;;  %v82_v20 = vld [vmem:[#allocation5 + $0x50] sm:$0xff]  ;;  %v83_v21 = vld [vmem:[#allocation5 + $0x58] sm:$0xff]  ;;  %v80_v22 = vld [vmem:[#allocation5 + $0x40] sm:$0xff] }
  0x17   :  { %v81_v23 = vld [vmem:[#allocation5 + $0x48] sm:$0xff]  ;;  %v78_v24 = vld [vmem:[#allocation5 + $0x30] sm:$0xff]  ;;  %v79_v25 = vld [vmem:[#allocation5 + $0x38] sm:$0xff] }
  0x18   :  { %108 = vmatpush.msra.mxu0 %v94_v8  ;;  %128 = vmatpush.msra.mxu1 %v95_v9  ;;  %v76_v26 = vld [vmem:[#allocation5 + $0x20] sm:$0xff]  ;;  %v77_v27 = vld [vmem:[#allocation5 + $0x28] sm:$0xff]  ;;  %v74_v28 = vld [vmem:[#allocation5 + $0x10] sm:$0xff] }
  0x19   :  { %v75_v29 = vld [vmem:[#allocation5 + $0x18] sm:$0xff]  ;;  %v72_v30 = vld [vmem:[#allocation5] sm:$0xff]  ;;  %v73_v31 = vld [vmem:[#allocation5 + $0x8] sm:$0xff] }
  0x1a   :  { %109 = vmatpush.msra.mxu0 %v92_v10  ;;  %129 = vmatpush.msra.mxu1 %v93_v11  ;;  %v71_v32 = vld [vmem:[%s1158_s0] sm:$0xff]  ;;  %v145_v36 = vld [vmem:[%s1160_s2 + $0x8] sm:$0xff]  ;;  %s909_s0 = smov 127   ;;  %v981_v42 = vld [vmem:[#allocation2 + $0x10] sm:$0xff] }
  0x1b   :  { %v144_v33 = vld [vmem:[%s1160_s2] sm:$0xff]  ;;  %v989_v11 = vld [vmem:[#allocation2 + $0x8] sm:$0xff]  ;;  %s910_s2 = smov 126  }
  0x1c   :  { %110 = vmatpush.msra.mxu0 %v90_v12  ;;  %130 = vmatpush.msra.mxu1 %v91_v13  ;;  %v977_v37 = vld [vmem:[#allocation2] sm:$0xff] }
  0x1d   :  { %334 = vrot.lane.b32.xlu2 %v977_v37, %s909_s0 }
  0x1e   :  { %111 = vmatpush.msra.mxu0 %v88_v14  ;;  %131 = vmatpush.msra.mxu1 %v89_v15 }
  0x20   :  { %112 = vmatpush.msra.mxu0 %v86_v16  ;;  %132 = vmatpush.msra.mxu1 %v87_v17 }
  0x22   :  { %113 = vmatpush.msra.mxu0 %v84_v18  ;;  %133 = vmatpush.msra.mxu1 %v85_v19 }
  0x24   :  { %114 = vmatpush.msra.mxu0 %v82_v20  ;;  %134 = vmatpush.msra.mxu1 %v83_v21 }
  0x25   :  { %336 = vrot.lane.b32.xlu2 %v981_v42, %s909_s0 }
  0x26   :  { %115 = vmatpush.msra.mxu0 %v80_v22  ;;  %135 = vmatpush.msra.mxu1 %v81_v23 }
  0x28   :  { %116 = vmatpush.msra.mxu0 %v78_v24  ;;  %136 = vmatpush.msra.mxu1 %v79_v25 }
  0x2a   :  { %117 = vmatpush.msra.mxu0 %v76_v26  ;;  %137 = vmatpush.msra.mxu1 %v77_v27 }
  0x2c   :  { %118 = vmatpush.msra.mxu0 %v74_v28  ;;  %138 = vmatpush.msra.mxu1 %v75_v29 }
  0x2e   :  { %119 = vmatpush.msra.mxu0 %v72_v30  ;;  %139 = vmatpush.msra.mxu1 %v73_v31 }
  0x2f   :  { %120 = vmatmul.f32.vlgmr.msra.gmra.mxu0 %v71_v32  ;;  %140 = vmatmul.f32.vlgmr.msra.gmra.mxu1 %v71_v32 }
  0xac   :  { %v121_v34 = vpop.f32.mrf.mxu0  ;;  %v141_v35 = vpop.f32.mrf.mxu1 }
  0xad   :  { %168 = vmatpush.msra.mxu2 %v121_v34  ;;  %191 = vmatpush.msra.mxu3 %v141_v35 }
  0xae   :  { %737 = vmatmul.msk.f32.vlgmr.msra.gmra.mxu2 %vm146_vm0, %v144_v33  ;;  %739 = vmatmul.msk.f32.vlgmr.msra.gmra.mxu3 %vm146_vm0, %v144_v33 }
  0xb6   :  { %738 = vmatmul.msk.f32.gmra.mxu2 %vm146_vm0, %v145_v36  ;;  %740 = vmatmul.msk.f32.gmra.mxu3 %vm146_vm0, %v145_v36  ;;  %v1013_v36 = vld [vmem:[#allocation2 + $0x18] sm:$0xff] }
 0x131   :  { %v170_v38 = vpop.f32.mrf.mxu2  ;;  %v193_v39 = vpop.f32.mrf.mxu3 }
 0x132   :  { %v741_v40 = vmul.f32 -1.442695, %v170_v38  ;;  %v742_v41 = vmul.f32 -1.442695, %v193_v39  ;;  %v323_v39 = vlaneseq }
 0x134   :  { %756 = vpow2.f32 %v741_v40  ;;  %v1023_v40 = vand.u32 127, %v323_v39 }
 0x135   :  { %758 = vpow2.f32 %v742_v41 }
 0x139   :  { %v173_v43 = vpop.f32.mrf.mxu2  ;;  %v196_v44 = vpop.f32.mrf.mxu3 }
 0x13a   :  { %v757_v45 = vpop.eup %756  ;;  %v743_v46 = vmul.f32 -1.442695, %v173_v43  ;;  %v744_v49 = vmul.f32 -1.442695, %v196_v44 }
 0x13b   :  { %v759_v47 = vpop.eup %758  ;;  %v211_v48 = vadd.f32 1.0, %v757_v45 }
 0x13c   :  { %v212_v50 = vadd.f32 1.0, %v759_v47  ;;  %760 = vpow2.f32 %v743_v46 }
 0x13d   :  { %762 = vrcp.f32 %v211_v48  ;;  %v226_v61 = vand.u32 2147483648, %v211_v48  ;;  %v224_v1 = vand.u32 2147483647, %v211_v48  ;;  %vm220_vm5 = vweird.f32 %v211_v48 }
 0x13e   :  { %764 = vrcp.f32 %v212_v50  ;;  %v241_v59 = vand.u32 2147483648, %v212_v50  ;;  %vm235_vm1 = vweird.f32 %v212_v50  ;;  %v239_v63 = vand.u32 2147483647, %v212_v50 }
 0x13f   :  { %766 = vpow2.f32 %v744_v49  ;;  %v227_v8 = vor.u32 1.1754944e-38, %v226_v61  ;;  %vm225_vm8 = vcmp.eq.f32.partialorder %v224_v1, 8.507059e+37  ;;  %v335_v49 = vpop.permute.xlu2 %334 }
 0x140   :  { %v242_v4 = vor.u32 1.1754944e-38, %v241_v59  ;;  %vm240_vm6 = vcmp.eq.f32.partialorder %v239_v63, 8.507059e+37 }
 0x142   :  { %v761_v51 = vpop.eup %760 }
 0x143   :  { %v763_v52 = vpop.eup %762  ;;  %v213_v53 = vadd.f32 1.0, %v761_v51 }
 0x144   :  { %v765_v54 = vpop.eup %764  ;;  %v216_v55 = vmul.f32 %v763_v52, %v211_v48  ;;  %vm221_vm3 = vweird.f32 %v763_v52 }
 0x145   :  { %v767_v56 = vpop.eup %766  ;;  %768 = vrcp.f32 %v213_v53  ;;  %v231_v57 = vmul.f32 %v765_v54, %v212_v50  ;;  %vm236_vm2 = vweird.f32 %v765_v54  ;;  %vm222_vm7 = vmor %vm220_vm5, %vm221_vm3  ;;  %v256_v19 = vand.u32 2147483648, %v213_v53 }
 0x146   :  { %v214_v58 = vadd.f32 1.0, %v767_v56  ;;  %v217_v60 = vsub.f32 1.0, %v216_v55  ;;  %vm985_vm4 = vmor %vm235_vm1, %vm236_vm2  ;;  %v254_v23 = vand.u32 2147483647, %v213_v53  ;;  %vm250_vm12 = vweird.f32 %v213_v53 }
 0x147   :  { %v232_v62 = vsub.f32 1.0, %v231_v57  ;;  %v257_v28 = vor.u32 1.1754944e-38, %v256_v19  ;;  %vm325_vm1 = vcmp.lt.s32.totalorder %v1023_v40, 127  ;;  %v337_v56 = vpop.permute.xlu2 %336  ;;  %vm358_vm2 = vcmp.lt.s32.totalorder %v1023_v40, 126 }
 0x148   :  { %770 = vrcp.f32 %v214_v58  ;;  %v218_v0 = vmul.f32 %v763_v52, %v217_v60  ;;  %v271_v21 = vand.u32 2147483648, %v214_v58  ;;  %vm265_vm10 = vweird.f32 %v214_v58 }
 0x149   :  { %v233_v2 = vmul.f32 %v765_v54, %v232_v62  ;;  %v269_v25 = vand.u32 2147483647, %v214_v58  ;;  %vm255_vm15 = vcmp.eq.f32.partialorder %v254_v23, 8.507059e+37  ;;  %vm391_vm3 = vcmp.lt.s32.totalorder %v1023_v40, 124 }
 0x14a   :  { %v219_v5 = vadd.f32 %v763_v52, %v218_v0  ;;  %v272_v29 = vor.u32 1.1754944e-38, %v271_v21  ;;  %vm501_vm5 = vcmask 1040384  }
 0x14b   :  { %v769_v6 = vpop.eup %768  ;;  %v234_v7 = vadd.f32 %v765_v54, %v233_v2  ;;  %vm270_vm0 = vcmp.eq.f32.partialorder %v269_v25, 8.507059e+37 }
 0x14c   :  { %v223_v9 = vsel %vm222_vm7, %v763_v52, %v219_v5  ;;  %v246_v10 = vmul.f32 %v769_v6, %v213_v53  ;;  %vm251_vm9 = vweird.f32 %v769_v6  ;;  %vm507_vm7 = vcmask 1042432  }
 0x14d   :  { %v238_v12 = vsel %vm985_vm4, %v765_v54, %v234_v7  ;;  %v993_v13 = vsel %vm225_vm8, %v227_v8, %v223_v9  ;;  %vm252_vm13 = vmor %vm250_vm12, %vm251_vm9  ;;  %vm424_vm4 = vcmp.lt.s32.totalorder %v1023_v40, 120 }
 0x14e   :  { %v771_v14 = vpop.eup %770  ;;  %v995_v15 = vsel %vm240_vm6, %v242_v4, %v238_v12  ;;  %315 = vrot.lane.b32.xlu0 %v993_v13, %s909_s0  ;;  %v247_v16 = vsub.f32 1.0, %v246_v10  ;;  %v279_v17 = vmul.f32 %v977_v37, %v993_v13  ;;  %vm504_vm6 = vcmask 1041408  }
 0x14f   :  { %319 = vrot.lane.b32.xlu1 %v995_v15, %s909_s0  ;;  %v261_v18 = vmul.f32 %v771_v14, %v214_v58  ;;  %v280_v20 = vmul.f32 %v989_v11, %v995_v15  ;;  %vm266_vm11 = vweird.f32 %v771_v14 }
 0x150   :  { %v248_v22 = vmul.f32 %v769_v6, %v247_v16  ;;  %283 = vst [vmem:[#allocation8] sm:$0xff] %v279_v17  ;;  %vm267_vm14 = vmor %vm265_vm10, %vm266_vm11 }
 0x151   :  { %v262_v24 = vsub.f32 1.0, %v261_v18  ;;  %284 = vst [vmem:[#allocation8 + $0x8] sm:$0xff] %v280_v20 }
 0x152   :  { %v249_v26 = vadd.f32 %v769_v6, %v248_v22 }
 0x153   :  { %v263_v27 = vmul.f32 %v771_v14, %v262_v24 }
 0x154   :  { %v253_v30 = vsel %vm252_vm13, %v769_v6, %v249_v26 }
 0x155   :  { %v264_v31 = vadd.f32 %v771_v14, %v263_v27  ;;  %v1005_v32 = vsel %vm255_vm15, %v257_v28, %v253_v30 }
 0x156   :  { %317 = vrot.lane.b32.xlu0 %v1005_v32, %s909_s0  ;;  %v281_v33 = vmul.f32 %v981_v42, %v1005_v32 }
 0x157   :  { %v268_v34 = vsel %vm267_vm14, %v771_v14, %v264_v31 }
 0x158   :  { %v1011_v35 = vsel %vm270_vm0, %v272_v29, %v268_v34  ;;  %285 = vst [vmem:[#allocation8 + $0x10] sm:$0xff] %v281_v33 }
 0x159   :  { %321 = vrot.lane.b32.xlu1 %v1011_v35, %s909_s0  ;;  %v282_v38 = vmul.f32 %v1013_v36, %v1011_v35 }
 0x15b   :  { %286 = vst [vmem:[#allocation8 + $0x18] sm:$0xff] %v282_v38 }
 0x15c   :  { %713 = dma.vmem_to_hbm [thread:$0]  %s706_s23, 512, %s708_s21, [#allocation4], %s905_s29, %s905_s29, %s906_s30  }
 0x15e   :  { %338 = vrot.lane.b32.xlu0 %v989_v11, %s909_s0 }
 0x161   :  { %340 = vrot.lane.b32.xlu1 %v1013_v36, %s909_s0 }
 0x1c0   :  { %v316_v41 = vpop.permute.xlu0 %315 }
 0x1c1   :  { %v320_v43 = vpop.permute.xlu1 %319 }
 0x1c2   :  { %v326_v44 = vsel %vm325_vm1, %v316_v41, %v320_v43  ;;  %v328_v45 = vsel %vm325_vm1, %v320_v43, %v316_v41 }
 0x1c3   :  { %v330_v46 = vmax.f32 %v993_v13, %v326_v44  ;;  %v331_v47 = vmax.f32 %v995_v15, %v328_v45 }
 0x1c5   :  { %354 = vrot.lane.b32.xlu1 %v331_v47, %s910_s2  ;;  %350 = vrot.lane.b32.xlu2 %v330_v46, %s910_s2 }
 0x1c8   :  { %v318_v48 = vpop.permute.xlu0 %317 }
 0x1cb   :  { %v322_v50 = vpop.permute.xlu1 %321 }
 0x1cc   :  { %v329_v51 = vsel %vm325_vm1, %v322_v50, %v318_v48  ;;  %v327_v62 = vsel %vm325_vm1, %v318_v48, %v322_v50 }
 0x1cd   :  { %v333_v52 = vmax.f32 %v1011_v35, %v329_v51  ;;  %v332_v63 = vmax.f32 %v1005_v32, %v327_v62  ;;  %v573_v62 = vld [vmem:[#allocation7 + $0x1f8] sm:$0xff] }
 0x1ce   :  { %634 = vmatpush.msrb.mxu1 %v573_v62 }
 0x1cf   :  { %356 = vrot.lane.b32.xlu2 %v333_v52, %s910_s2 }
 0x1d0   :  { %v339_v53 = vpop.permute.xlu0 %338 }
 0x1d1   :  { %v342_v54 = vsel %vm325_vm1, %v335_v49, %v339_v53  ;;  %v344_v55 = vsel %vm325_vm1, %v339_v53, %v335_v49 }
 0x1d2   :  { %v346_v57 = vmax.f32 %v977_v37, %v342_v54  ;;  %v347_v58 = vmax.f32 %v989_v11, %v344_v55 }
 0x1d3   :  { %v341_v59 = vpop.permute.xlu1 %340 }
 0x1d4   :  { %367 = vrot.lane.b32.xlu0 %v346_v57, %s910_s2  ;;  %v343_v60 = vsel %vm325_vm1, %v337_v56, %v341_v59  ;;  %v345_v0 = vsel %vm325_vm1, %v341_v59, %v337_v56  ;;  %v540_v59 = vld [vmem:[#allocation7 + $0xf0] sm:$0xff] }
 0x1d5   :  { %v348_v61 = vmax.f32 %v981_v42, %v343_v60  ;;  %v349_v1 = vmax.f32 %v1013_v36, %v345_v0  ;;  %v572_v60 = vld [vmem:[#allocation7 + $0x1f0] sm:$0xff]  ;;  %574 = vmatpush.msrb.mxu2 %v540_v59  ;;  %v570_v0 = vld [vmem:[#allocation7 + $0x1e0] sm:$0xff]  ;;  %v551_v59 = vld [vmem:[#allocation7 + $0x148] sm:$0xff] }
 0x1d6   :  { %594 = vmatpush.msrb.mxu3 %v572_v60 }
 0x1d7   :  { %371 = vrot.lane.b32.xlu2 %v347_v58, %s910_s2  ;;  %369 = vrot.lane.b32.xlu1 %v348_v61, %s910_s2 }
 0x1d8   :  { %595 = vmatpush.msrb.mxu3 %v570_v0  ;;  %v548_v0 = vld [vmem:[#allocation7 + $0x130] sm:$0xff] }
 0x1dc   :  { %352 = vrot.lane.b32.xlu0 %v332_v63, %s910_s2 }
 0x1e4   :  { %373 = vrot.lane.b32.xlu0 %v349_v1, %s910_s2 }
 0x21f   :  { %v351_v2 = vpop.permute.xlu2 %350 }
 0x229   :  { %v357_v8 = vpop.permute.xlu2 %356 }
 0x231   :  { %v372_v9 = vpop.permute.xlu2 %371 }
 0x237   :  { %v355_v3 = vpop.permute.xlu1 %354 }
 0x238   :  { %v359_v4 = vsel %vm358_vm2, %v351_v2, %v355_v3  ;;  %v361_v5 = vsel %vm358_vm2, %v355_v3, %v351_v2  ;;  %v571_v2 = vld [vmem:[#allocation7 + $0x1e8] sm:$0xff]  ;;  %v536_v3 = vld [vmem:[#allocation7 + $0xd0] sm:$0xff] }
 0x239   :  { %v363_v6 = vmax.f32 %v330_v46, %v359_v4  ;;  %v364_v7 = vmax.f32 %v331_v47, %v361_v5  ;;  %v568_v4 = vld [vmem:[#allocation7 + $0x1d0] sm:$0xff]  ;;  %635 = vmatpush.msrb.mxu1 %v571_v2  ;;  %v537_v5 = vld [vmem:[#allocation7 + $0xd8] sm:$0xff] }
 0x23a   :  { %596 = vmatpush.msrb.mxu3 %v568_v4  ;;  %v549_v2 = vld [vmem:[#allocation7 + $0x138] sm:$0xff] }
 0x23b   :  { %383 = vrot.lane.b32.xlu1 %v363_v6, %s911_s17  ;;  %387 = vrot.lane.b32.xlu0 %v364_v7, %s911_s17 }
 0x246   :  { %v368_v10 = vpop.permute.xlu0 %367 }
 0x247   :  { %v375_v12 = vsel %vm358_vm2, %v368_v10, %v372_v9  ;;  %v377_v22 = vsel %vm358_vm2, %v372_v9, %v368_v10  ;;  %v535_v9 = vld [vmem:[#allocation7 + $0xc8] sm:$0xff] }
 0x248   :  { %v379_v14 = vmax.f32 %v346_v57, %v375_v12  ;;  %v380_v26 = vmax.f32 %v347_v58, %v377_v22  ;;  %v567_v10 = vld [vmem:[#allocation7 + $0x1c8] sm:$0xff]  ;;  %v532_v12 = vld [vmem:[#allocation7 + $0xb0] sm:$0xff] }
 0x249   :  { %v370_v21 = vpop.permute.xlu1 %369  ;;  %v563_v22 = vld [vmem:[#allocation7 + $0x1a8] sm:$0xff] }
 0x24a   :  { %400 = vrot.lane.b32.xlu2 %v379_v14, %s911_s17 }
 0x24e   :  { %v353_v16 = vpop.permute.xlu0 %352 }
 0x24f   :  { %v360_v17 = vsel %vm358_vm2, %v353_v16, %v357_v8  ;;  %v362_v18 = vsel %vm358_vm2, %v357_v8, %v353_v16  ;;  %v566_v8 = vld [vmem:[#allocation7 + $0x1c0] sm:$0xff]  ;;  %v533_v16 = vld [vmem:[#allocation7 + $0xb8] sm:$0xff] }
 0x250   :  { %v365_v19 = vmax.f32 %v332_v63, %v360_v17  ;;  %v366_v20 = vmax.f32 %v333_v52, %v362_v18  ;;  %v538_v63 = vld [vmem:[#allocation7 + $0xe0] sm:$0xff]  ;;  %597 = vmatpush.msrb.mxu3 %v566_v8  ;;  %v565_v17 = vld [vmem:[#allocation7 + $0x1b8] sm:$0xff] }
 0x251   :  { %575 = vmatpush.msrb.mxu2 %v538_v63  ;;  %v530_v18 = vld [vmem:[#allocation7 + $0xa0] sm:$0xff]  ;;  %v516_v63 = vld [vmem:[#allocation7 + $0x30] sm:$0xff] }
 0x252   :  { %389 = vrot.lane.b32.xlu1 %v366_v20, %s911_s17  ;;  %385 = vrot.lane.b32.xlu2 %v365_v19, %s911_s17 }
 0x253   :  { %576 = vmatpush.msrb.mxu2 %v536_v3  ;;  %v514_v3 = vld [vmem:[#allocation7 + $0x20] sm:$0xff] }
 0x256   :  { %v374_v23 = vpop.permute.xlu0 %373 }
 0x257   :  { %v376_v24 = vsel %vm358_vm2, %v370_v21, %v374_v23  ;;  %v378_v25 = vsel %vm358_vm2, %v374_v23, %v370_v21  ;;  %v528_v23 = vld [vmem:[#allocation7 + $0x90] sm:$0xff] }
 0x258   :  { %v381_v27 = vmax.f32 %v348_v61, %v376_v24  ;;  %v382_v28 = vmax.f32 %v349_v1, %v378_v25  ;;  %v541_v61 = vld [vmem:[#allocation7 + $0xf8] sm:$0xff]  ;;  %v539_v1 = vld [vmem:[#allocation7 + $0xe8] sm:$0xff]  ;;  %v560_v24 = vld [vmem:[#allocation7 + $0x190] sm:$0xff] }
 0x259   :  { %614 = vmatpush.msrb.mxu0 %v541_v61  ;;  %v529_v25 = vld [vmem:[#allocation7 + $0x98] sm:$0xff] }
 0x25a   :  { %404 = vrot.lane.b32.xlu1 %v380_v26, %s911_s17  ;;  %406 = vrot.lane.b32.xlu2 %v382_v28, %s911_s17 }
 0x25b   :  { %402 = vrot.lane.b32.xlu0 %v381_v27, %s911_s17  ;;  %615 = vmatpush.msrb.mxu0 %v539_v1  ;;  %v517_v1 = vld [vmem:[#allocation7 + $0x38] sm:$0xff] }
 0x25d   :  { %616 = vmatpush.msrb.mxu0 %v537_v5 }
 0x25f   :  { %617 = vmatpush.msrb.mxu0 %v535_v9 }
 0x261   :  { %618 = vmatpush.msrb.mxu0 %v533_v16  ;;  %v513_v16 = vld [vmem:[#allocation7 + $0x18] sm:$0xff] }
 0x2a4   :  { %v401_v39 = vpop.permute.xlu2 %400 }
 0x2ac   :  { %v386_v41 = vpop.permute.xlu2 %385 }
 0x2ad   :  { %v384_v29 = vpop.permute.xlu1 %383  ;;  %v388_v30 = vpop.permute.xlu0 %387 }
 0x2ae   :  { %v392_v31 = vsel %vm391_vm3, %v384_v29, %v388_v30  ;;  %v394_v33 = vsel %vm391_vm3, %v388_v30, %v384_v29  ;;  %v527_v29 = vld [vmem:[#allocation7 + $0x88] sm:$0xff] }
 0x2af   :  { %v1072_v34 = vmax.f32 %v363_v6, %v392_v31  ;;  %v1074_v38 = vmax.f32 %v364_v7, %v394_v33  ;;  %v569_v6 = vld [vmem:[#allocation7 + $0x1d8] sm:$0xff]  ;;  %v534_v7 = vld [vmem:[#allocation7 + $0xc0] sm:$0xff]  ;;  %v559_v30 = vld [vmem:[#allocation7 + $0x188] sm:$0xff] }
 0x2b0   :  { %636 = vmatpush.msrb.mxu1 %v569_v6  ;;  %577 = vmatpush.msrb.mxu2 %v534_v7  ;;  %v524_v31 = vld [vmem:[#allocation7 + $0x70] sm:$0xff]  ;;  %v546_v6 = vld [vmem:[#allocation7 + $0x120] sm:$0xff]  ;;  %v515_v7 = vld [vmem:[#allocation7 + $0x28] sm:$0xff] }
 0x2b1   :  { %420 = vrot.lane.b32.xlu2 %v1074_v38, %s912_s18  ;;  %416 = vrot.lane.b32.xlu0 %v1072_v34, %s912_s18  ;;  %v556_v33 = vld [vmem:[#allocation7 + $0x170] sm:$0xff] }
 0x2b2   :  { %637 = vmatpush.msrb.mxu1 %v567_v10  ;;  %578 = vmatpush.msrb.mxu2 %v532_v12  ;;  %v547_v10 = vld [vmem:[#allocation7 + $0x128] sm:$0xff]  ;;  %v512_v12 = vld [vmem:[#allocation7 + $0x10] sm:$0xff] }
 0x2b4   :  { %v407_v47 = vpop.permute.xlu2 %406  ;;  %638 = vmatpush.msrb.mxu1 %v565_v17  ;;  %579 = vmatpush.msrb.mxu2 %v530_v18  ;;  %v545_v17 = vld [vmem:[#allocation7 + $0x118] sm:$0xff]  ;;  %v510_v18 = vld [vmem:[#allocation7] sm:$0xff] }
 0x2b6   :  { %639 = vmatpush.msrb.mxu1 %v563_v22  ;;  %580 = vmatpush.msrb.mxu2 %v528_v23  ;;  %v542_v23 = vld [vmem:[#allocation7 + $0x100] sm:$0xff] }
 0x2c4   :  { %v390_v43 = vpop.permute.xlu1 %389 }
 0x2c5   :  { %v395_v44 = vsel %vm391_vm3, %v390_v43, %v386_v41  ;;  %v393_v55 = vsel %vm391_vm3, %v386_v41, %v390_v43  ;;  %v308_v41 = vmax.f32 %v989_v11, %v1013_v36  ;;  %v301_v43 = vmax.f32 %v977_v37, %v981_v42  ;;  %v555_v11 = vld [vmem:[#allocation7 + $0x168] sm:$0xff]  ;;  %v520_v37 = vld [vmem:[#allocation7 + $0x50] sm:$0xff]  ;;  %v521_v36 = vld [vmem:[#allocation7 + $0x58] sm:$0xff] }
 0x2c6   :  { %v1080_v45 = vmax.f32 %v366_v20, %v395_v44  ;;  %v1100_v56 = vmax.f32 %v365_v19, %v393_v55  ;;  %v562_v19 = vld [vmem:[#allocation7 + $0x1a0] sm:$0xff]  ;;  %v531_v20 = vld [vmem:[#allocation7 + $0xa8] sm:$0xff]  ;;  %v557_v44 = vld [vmem:[#allocation7 + $0x178] sm:$0xff] }
 0x2c7   :  { %619 = vmatpush.msrb.mxu0 %v531_v20  ;;  %v552_v42 = vld [vmem:[#allocation7 + $0x150] sm:$0xff]  ;;  %v553_v55 = vld [vmem:[#allocation7 + $0x158] sm:$0xff] }
 0x2c8   :  { %422 = vrot.lane.b32.xlu0 %v1080_v45, %s912_s18 }
 0x2c9   :  { %620 = vmatpush.msrb.mxu0 %v529_v25 }
 0x2cb   :  { %621 = vmatpush.msrb.mxu0 %v527_v29  ;;  %v543_v29 = vld [vmem:[#allocation7 + $0x108] sm:$0xff] }
 0x2cc   :  { %v405_v46 = vpop.permute.xlu1 %404 }
 0x2cd   :  { %v408_v48 = vsel %vm391_vm3, %v401_v39, %v405_v46  ;;  %v410_v49 = vsel %vm391_vm3, %v405_v46, %v401_v39  ;;  %v403_v50 = vpop.permute.xlu0 %402  ;;  %v525_v39 = vld [vmem:[#allocation7 + $0x78] sm:$0xff]  ;;  %v294_v46 = vmax.f32 %v995_v15, %v1011_v35  ;;  %v518_v15 = vld [vmem:[#allocation7 + $0x40] sm:$0xff]  ;;  %v309_v35 = vrot.slane %v308_v41, 4 }
 0x2ce   :  { %v1087_v51 = vmax.f32 %v379_v14, %v408_v48  ;;  %v1089_v52 = vmax.f32 %v380_v26, %v410_v49  ;;  %v409_v53 = vsel %vm391_vm3, %v403_v50, %v407_v47  ;;  %v411_v57 = vsel %vm391_vm3, %v407_v47, %v403_v50  ;;  %v564_v14 = vld [vmem:[#allocation7 + $0x1b0] sm:$0xff]  ;;  %v561_v26 = vld [vmem:[#allocation7 + $0x198] sm:$0xff]  ;;  %622 = vmatpush.msrb.mxu0 %v525_v39  ;;  %v522_v48 = vld [vmem:[#allocation7 + $0x60] sm:$0xff] }
 0x2cf   :  { %v1093_v54 = vmax.f32 %v381_v27, %v409_v53  ;;  %v1105_v58 = vmax.f32 %v382_v28, %v411_v57  ;;  %598 = vmatpush.msrb.mxu3 %v564_v14  ;;  %640 = vmatpush.msrb.mxu1 %v561_v26  ;;  %v526_v27 = vld [vmem:[#allocation7 + $0x80] sm:$0xff]  ;;  %v287_v47 = vmax.f32 %v993_v13, %v1005_v32  ;;  %v523_v50 = vld [vmem:[#allocation7 + $0x68] sm:$0xff]  ;;  %v302_v57 = vrot.slane %v301_v43, 4  ;;  %v544_v14 = vld [vmem:[#allocation7 + $0x110] sm:$0xff] }
 0x2d0   :  { %433 = vrot.lane.b32.xlu1 %v1087_v51, %s912_s18  ;;  %437 = vrot.lane.b32.xlu0 %v1089_v52, %s912_s18  ;;  %v558_v28 = vld [vmem:[#allocation7 + $0x180] sm:$0xff]  ;;  %v519_v32 = vld [vmem:[#allocation7 + $0x48] sm:$0xff]  ;;  %v295_v60 = vrot.slane %v294_v46, 4  ;;  %v310_v4 = vmax.f32 %v308_v41, %v309_v35 }
 0x2d1   :  { %435 = vrot.lane.b32.xlu2 %v1093_v54, %s912_s18  ;;  %599 = vmatpush.msrb.mxu3 %v562_v19  ;;  %v554_v49 = vld [vmem:[#allocation7 + $0x160] sm:$0xff]  ;;  %v288_v61 = vrot.slane %v287_v47, 4  ;;  %v303_v5 = vmax.f32 %v301_v43, %v302_v57 }
 0x2d2   :  { %581 = vmatpush.msrb.mxu2 %v526_v27  ;;  %641 = vmatpush.msrb.mxu1 %v559_v30  ;;  %v550_v13 = vld [vmem:[#allocation7 + $0x140] sm:$0xff]  ;;  %v296_v8 = vmax.f32 %v294_v46, %v295_v60  ;;  %v311_v19 = vrot.slane %v310_v4, 2 }
 0x2d3   :  { %600 = vmatpush.msrb.mxu3 %v560_v24  ;;  %623 = vmatpush.msrb.mxu0 %v523_v50  ;;  %v289_v9 = vmax.f32 %v287_v47, %v288_v61  ;;  %v304_v20 = vrot.slane %v303_v5, 2  ;;  %v511_v24 = vld [vmem:[#allocation7 + $0x8] sm:$0xff] }
 0x2d4   :  { %582 = vmatpush.msrb.mxu2 %v524_v31  ;;  %642 = vmatpush.msrb.mxu1 %v557_v44  ;;  %v297_v25 = vrot.slane %v296_v8, 2 }
 0x2d5   :  { %601 = vmatpush.msrb.mxu3 %v558_v28  ;;  %624 = vmatpush.msrb.mxu0 %v521_v36  ;;  %v290_v26 = vrot.slane %v289_v9, 2  ;;  %v305_v39 = vmax.f32 %v303_v5, %v304_v20 }
 0x2d6   :  { %583 = vmatpush.msrb.mxu2 %v522_v48  ;;  %643 = vmatpush.msrb.mxu1 %v555_v11  ;;  %v298_v44 = vmax.f32 %v296_v8, %v297_v25 }
 0x2d7   :  { %602 = vmatpush.msrb.mxu3 %v556_v33  ;;  %625 = vmatpush.msrb.mxu0 %v519_v32  ;;  %v312_v33 = vmax.f32 %v310_v4, %v311_v19  ;;  %v291_v46 = vmax.f32 %v289_v9, %v290_v26  ;;  %v306_v35 = vrot.slane %v305_v39, 1 }
 0x2d8   :  { %418 = vrot.lane.b32.xlu1 %v1100_v56, %s912_s18  ;;  %584 = vmatpush.msrb.mxu2 %v520_v37  ;;  %v299_v36 = vrot.slane %v298_v44, 1 }
 0x2d9   :  { %603 = vmatpush.msrb.mxu3 %v554_v49  ;;  %644 = vmatpush.msrb.mxu1 %v553_v55  ;;  %v292_v55 = vrot.slane %v291_v46, 1  ;;  %v307_v9 = vmax.f32 %v305_v39, %v306_v35 }
 0x2da   :  { %585 = vmatpush.msrb.mxu2 %v518_v15  ;;  %626 = vmatpush.msrb.mxu0 %v517_v1  ;;  %v313_v15 = vrot.slane %v312_v33, 1 }
 0x2db   :  { %604 = vmatpush.msrb.mxu3 %v552_v42  ;;  %645 = vmatpush.msrb.mxu1 %v551_v59  ;;  %v293_v8 = vmax.f32 %v291_v46, %v292_v55 }
 0x2dc   :  { %586 = vmatpush.msrb.mxu2 %v516_v63  ;;  %627 = vmatpush.msrb.mxu0 %v515_v7 }
 0x2dd   :  { %605 = vmatpush.msrb.mxu3 %v550_v13  ;;  %646 = vmatpush.msrb.mxu1 %v549_v2 }
 0x2de   :  { %587 = vmatpush.msrb.mxu2 %v514_v3  ;;  %628 = vmatpush.msrb.mxu0 %v513_v16 }
 0x2df   :  { %606 = vmatpush.msrb.mxu3 %v548_v0  ;;  %647 = vmatpush.msrb.mxu1 %v547_v10  ;;  %v300_v10 = vmax.f32 %v298_v44, %v299_v36 }
 0x2e0   :  { %439 = vrot.lane.b32.xlu1 %v1105_v58, %s912_s18  ;;  %588 = vmatpush.msrb.mxu2 %v512_v12 }
 0x2e1   :  { %607 = vmatpush.msrb.mxu3 %v546_v6  ;;  %648 = vmatpush.msrb.mxu1 %v545_v17 }
 0x2e2   :  { %589 = vmatpush.msrb.mxu2 %v510_v18  ;;  %629 = vmatpush.msrb.mxu0 %v511_v24  ;;  %v496_v24 = vmul.f32 %v300_v10, %v300_v10 }
 0x2e3   :  { %608 = vmatpush.msrb.mxu3 %v544_v14  ;;  %649 = vmatpush.msrb.mxu1 %v543_v29 }
 0x2e5   :  { %609 = vmatpush.msrb.mxu3 %v542_v23  ;;  %v497_v23 = vmul.f32 %v307_v9, %v307_v9 }
 0x30b   :  { %v421_v27 = vpop.permute.xlu2 %420 }
 0x323   :  { %v1108_v21 = vpop.permute.xlu0 %416 }
 0x324   :  { %v425_v41 = vsel %vm424_vm4, %v1108_v21, %v421_v27  ;;  %v427_v43 = vsel %vm424_vm4, %v421_v27, %v1108_v21 }
 0x325   :  { %v429_v11 = vmax.f32 %v1072_v34, %v425_v41  ;;  %v430_v37 = vmax.f32 %v1074_v38, %v427_v43 }
 0x327   :  { %v468_v38 = vmul.f32 %v430_v37, %v430_v37 }
 0x32b   :  { %v436_v57 = vpop.permute.xlu2 %435 }
 0x33a   :  { %v1118_v53 = vpop.permute.xlu0 %422 }
 0x342   :  { %v434_v62 = vpop.permute.xlu1 %433  ;;  %v438_v22 = vpop.permute.xlu0 %437 }
 0x343   :  { %v441_v30 = vsel %vm424_vm4, %v434_v62, %v438_v22  ;;  %v443_v31 = vsel %vm424_vm4, %v438_v22, %v434_v62  ;;  %v495_v22 = vmul.f32 %v293_v8, %v293_v8 }
 0x344   :  { %v445_v49 = vmax.f32 %v1087_v51, %v441_v30  ;;  %v446_v50 = vmax.f32 %v1089_v52, %v443_v31  ;;  %v467_v52 = vmul.f32 %v429_v11, %v429_v11 }
 0x345   :  { %v499_v41 = vadd.f32 %v497_v23, %v495_v22 }
 0x346   :  { %v471_v32 = vmul.f32 %v445_v49, %v445_v49  ;;  %v449_v59 = vmul.f32 %v445_v49, %v429_v11  ;;  %v450_v60 = vmul.f32 %v446_v50, %v430_v37  ;;  %v493_v49 = vmul.f32 %v307_v9, %v293_v8 }
 0x348   :  { %v475_v3 = vadd.f32 %v471_v32, %v467_v52  ;;  %v502_v36 = vsel %vm501_vm5, %v493_v49, %v499_v41 }
 0x34a   :  { %v419_v28 = vpop.permute.xlu1 %418 }
 0x34b   :  { %v426_v47 = vsel %vm424_vm4, %v419_v28, %v1118_v53  ;;  %v428_v48 = vsel %vm424_vm4, %v1118_v53, %v419_v28  ;;  %v472_v53 = vmul.f32 %v446_v50, %v446_v50 }
 0x34c   :  { %v431_v21 = vmax.f32 %v1100_v56, %v426_v47  ;;  %v432_v42 = vmax.f32 %v1080_v45, %v428_v48 }
 0x34d   :  { %v476_v4 = vadd.f32 %v472_v53, %v468_v38 }
 0x34e   :  { %v469_v61 = vmul.f32 %v431_v21, %v431_v21  ;;  %v470_v62 = vmul.f32 %v432_v42, %v432_v42 }
 0x352   :  { %v440_v13 = vpop.permute.xlu1 %439 }
 0x353   :  { %v442_v51 = vsel %vm424_vm4, %v436_v57, %v440_v13  ;;  %v444_v34 = vsel %vm424_vm4, %v440_v13, %v436_v57 }
 0x354   :  { %v447_v56 = vmax.f32 %v1093_v54, %v442_v51  ;;  %v448_v45 = vmax.f32 %v1105_v58, %v444_v34  ;;  %v314_v54 = vmax.f32 %v312_v33, %v313_v15 }
 0x356   :  { %v451_v63 = vmul.f32 %v447_v56, %v431_v21  ;;  %v452_v0 = vmul.f32 %v448_v45, %v432_v42  ;;  %v473_v1 = vmul.f32 %v447_v56, %v447_v56  ;;  %v474_v2 = vmul.f32 %v448_v45, %v448_v45 }
 0x357   :  { %v498_v25 = vmul.f32 %v314_v54, %v314_v54  ;;  %v494_v50 = vmul.f32 %v314_v54, %v300_v10 }
 0x358   :  { %v453_v5 = vadd.f32 %v451_v63, %v449_v59  ;;  %v460_v6 = vadd.f32 %v452_v0, %v450_v60  ;;  %v477_v40 = vadd.f32 %v473_v1, %v469_v61  ;;  %v478_v7 = vadd.f32 %v474_v2, %v470_v62 }
 0x359   :  { %v500_v43 = vadd.f32 %v498_v25, %v496_v24 }
 0x35a   :  { %v454_v12 = vrot.slane %v453_v5, 4  ;;  %v461_v58 = vrot.slane %v460_v6, 4  ;;  %v479_v14 = vadd.f32 %v477_v40, %v475_v3  ;;  %v486_v16 = vadd.f32 %v478_v7, %v476_v4 }
 0x35b   :  { %v503_v55 = vsel %vm501_vm5, %v494_v50, %v500_v43 }
 0x35c   :  { %v455_v17 = vadd.f32 %v454_v12, %v453_v5  ;;  %v462_v18 = vadd.f32 %v461_v58, %v460_v6  ;;  %v480_v19 = vrot.slane %v479_v14, 4  ;;  %v487_v20 = vrot.slane %v486_v16, 4 }
 0x35e   :  { %v456_v26 = vrot.slane %v455_v17, 2  ;;  %v463_v27 = vrot.slane %v462_v18, 2  ;;  %v481_v28 = vadd.f32 %v480_v19, %v479_v14  ;;  %v488_v29 = vadd.f32 %v487_v20, %v486_v16 }
 0x360   :  { %v457_v30 = vadd.f32 %v456_v26, %v455_v17  ;;  %v482_v31 = vrot.slane %v481_v28, 2  ;;  %v464_v39 = vadd.f32 %v463_v27, %v462_v18  ;;  %v489_v33 = vrot.slane %v488_v29, 2 }
 0x362   :  { %v458_v44 = vrot.slane %v457_v30, 1  ;;  %v483_v46 = vadd.f32 %v482_v31, %v481_v28  ;;  %v465_v47 = vrot.slane %v464_v39, 1  ;;  %v490_v48 = vadd.f32 %v489_v33, %v488_v29 }
 0x364   :  { %v459_v11 = vadd.f32 %v458_v44, %v457_v30  ;;  %v484_v37 = vrot.slane %v483_v46, 1  ;;  %v466_v21 = vadd.f32 %v465_v47, %v464_v39  ;;  %v491_v42 = vrot.slane %v490_v48, 1 }
 0x366   :  { %v485_v15 = vadd.f32 %v484_v37, %v483_v46  ;;  %v505_v35 = vsel %vm504_vm6, %v502_v36, %v459_v11  ;;  %v492_v57 = vadd.f32 %v491_v42, %v490_v48  ;;  %v506_v13 = vsel %vm504_vm6, %v503_v55, %v466_v21 }
 0x368   :  { %v508_v32 = vsel %vm507_vm7, %v505_v35, %v485_v15  ;;  %v509_v53 = vsel %vm507_vm7, %v506_v13, %v492_v57 }
 0x369   :  { %590 = vmatmul.f32.vlgmr.msrb.gmra.mxu2 %v508_v32  ;;  %610 = vmatmul.f32.vlgmr.msrb.gmra.mxu3 %v509_v53 }
 0x36a   :  { %630 = vmatmul.f32.vlgmr.msrb.gmra.mxu0 %v508_v32  ;;  %650 = vmatmul.f32.vlgmr.msrb.gmra.mxu1 %v509_v53 }
 0x3e7   :  { %v631_v51 = vpop.f32.mrf.mxu0  ;;  %v651_v34 = vpop.f32.mrf.mxu1 }
 0x3e8   :  { %v652_v52 = vadd.f32 %v651_v34, %v631_v51 }
 0x3ea   :  { %v656_v38 = vmax.f32 %v652_v52, 1e-06  ;;  %v655_v20 = vmul.f32 2.0, %v652_v52 }
 0x3ec   :  { %v658_v56 = vrot.slane %v656_v38, 1  ;;  %v591_v45 = vpop.f32.mrf.mxu2  ;;  %v611_v59 = vpop.f32.mrf.mxu3 }
 0x3ed   :  { %v612_v60 = vadd.f32 %v611_v59, %v591_v45 }
 0x3ee   :  { %772 = vrcp.f32 %v658_v56  ;;  %vm665_vm9 = vweird.f32 %v658_v56  ;;  %v671_v40 = vand.u32 2147483648, %v658_v56  ;;  %v669_v8 = vand.u32 2147483647, %v658_v56 }
 0x3ef   :  { %v675_v61 = vmax.f32 %v612_v60, 1e-06  ;;  %v654_v16 = vmul.f32 2.0, %v612_v60 }
 0x3f0   :  { %v672_v58 = vor.u32 1.1754944e-38, %v671_v40  ;;  %vm670_vm14 = vcmp.eq.f32.partialorder %v669_v8, 8.507059e+37 }
 0x3f1   :  { %v677_v62 = vrot.slane %v675_v61, 1 }
 0x3f3   :  { %774 = vrcp.f32 %v677_v62  ;;  %v690_v7 = vand.u32 2147483648, %v677_v62  ;;  %v688_v10 = vand.u32 2147483647, %v677_v62  ;;  %vm684_vm12 = vweird.f32 %v677_v62 }
 0x3f4   :  { %v773_v63 = vpop.eup %772 }
 0x3f5   :  { %v661_v0 = vmul.f32 %v773_v63, %v658_v56  ;;  %vm666_vm8 = vweird.f32 %v773_v63  ;;  %v691_v14 = vor.u32 1.1754944e-38, %v690_v7  ;;  %vm689_vm15 = vcmp.eq.f32.partialorder %v688_v10, 8.507059e+37 }
 0x3f6   :  { %vm667_vm11 = vmor %vm665_vm9, %vm666_vm8 }
 0x3f7   :  { %v662_v1 = vsub.f32 1.0, %v661_v0 }
 0x3f9   :  { %v775_v2 = vpop.eup %774  ;;  %v663_v3 = vmul.f32 %v773_v63, %v662_v1 }
 0x3fa   :  { %v680_v4 = vmul.f32 %v775_v2, %v677_v62  ;;  %vm685_vm10 = vweird.f32 %v775_v2 }
 0x3fb   :  { %v664_v5 = vadd.f32 %v773_v63, %v663_v3  ;;  %vm686_vm13 = vmor %vm684_vm12, %vm685_vm10 }
 0x3fc   :  { %v681_v6 = vsub.f32 1.0, %v680_v4 }
 0x3fd   :  { %v668_v54 = vsel %vm667_vm11, %v773_v63, %v664_v5 }
 0x3fe   :  { %v682_v9 = vmul.f32 %v775_v2, %v681_v6  ;;  %v673_v18 = vsel %vm670_vm14, %v672_v58, %v668_v54 }
 0x3ff   :  { %v674_v23 = vmul.f32 %v673_v18, %v655_v20 }
 0x400   :  { %v683_v12 = vadd.f32 %v775_v2, %v682_v9 }
 0x402   :  { %v687_v17 = vsel %vm686_vm13, %v775_v2, %v683_v12 }
 0x403   :  { %v692_v19 = vsel %vm689_vm15, %v691_v14, %v687_v17 }
 0x404   :  { %v693_v22 = vmul.f32 %v692_v19, %v654_v16 }
 0x406   :  { %v695_v24 = vrot.slane %v693_v22, 6 }
 0x408   :  { %v697_v25 = vadd.f32 %v695_v24, %v674_v23 }
 0x40a   :  { %v698_v26 = vmul.f32 0.5, %v697_v25 }
 0x40c   :  { %v699_v27 = vperm.slane %v698_v26, 2 }
 0x40e   :  { %700 = vst [vmem:[#allocation9] sm:$0xff] %v699_v27 }
 0x40f   :  { %724 = dma.vmem_to_hbm [thread:$0]  %s720_s24, 128, %s722_s27, [#allocation10]  }
 0x410   :  { %900 = dma.done.wait [#allocation4], 512  }
 0x411   :  { %901 = vsyncadd [#allocation4], 4294966784 }
 0x412   :  { %902 = dma.done.wait [#allocation10], 128  }
 0x413   :  { %903 = vsyncadd [#allocation10], 4294967168 }
 0x414   :  { %733 = vsyncpa [#allocation3], 1 }
 0x415   :  { %734 = vsyncpa [#allocation6], 1 }
 0x416   :  { %735 = vsyncpa [#allocation4], 1 }
 0x417   :  { %736 = vsyncpa [#allocation10], 1 }

</bundles_post_ra>
